<compile_context>
chip_gen: v7x
topology: tpu7x:2x2x1
jax: 0.10.0
libtpu: 0.0.40
codegen_flags: <defaults>
</compile_context>

<pallas_src>
import math

import jax
import jax.numpy as jnp
from jax.experimental import pallas as pl
from jax.experimental.pallas import tpu as pltpu


def _round_up(x: int, m: int) -> int:
    return ((x + m - 1) // m) * m


def _sublane(dtype) -> int:
    # 8 rows/vreg for 4-byte types, 16 for bf16/fp16, 32 for int8/fp8.
    return max(8, 32 // jnp.dtype(dtype).itemsize)


def _pad_block_bytes(shape, dtype) -> int:
    """Physical VMEM footprint of a 2-D block: (sublane, 128)-tile padded."""
    r, c = int(shape[0]), int(shape[1])
    return (_round_up(max(r, 1), _sublane(dtype))
            * _round_up(max(c, 1), 128)
            * jnp.dtype(dtype).itemsize)


def _vmem_capacity_bytes() -> int:
    try:
        return int(pltpu.get_tpu_info().vmem_capacity_bytes)
    except Exception:
        return 64 << 20  # most conservative (v7x per-TC) if the query fails


def _make_mlp_kernel(n_layers: int):
    """Fused MLP kernel: n_layers linear layers, ReLU between them."""

    def kernel(*refs):
        x_ref = refs[0]
        out_ref = refs[-1]
        param_refs = refs[1:-1]  # interleaved (W[in,out], b[1,out]) pairs

        h = x_ref[...]
        for i in range(n_layers):
            w = param_refs[2 * i][...]
            b = param_refs[2 * i + 1][...]
            lhs = h if h.dtype == w.dtype else h.astype(w.dtype)  # MXU-native operand
            acc = jnp.dot(lhs, w, preferred_element_type=jnp.float32)
            acc = acc + b.astype(jnp.float32)
            if i < n_layers - 1:
                h = jnp.maximum(acc, 0.0)                 # nn.ReLU (VPU, f32)
            else:
                out_ref[...] = acc.astype(out_ref.dtype)  # final store

    return kernel


def mlp_forward(x, params, squeeze_output: bool = False, mxu_dtype=None):
    """params: list of (W[in,out], b[out]) pairs. Returns MLP(x).

    mxu_dtype: optionally cast weights / matmul operands (e.g. jnp.bfloat16)
    for native-rate MXU throughput; accumulation and bias/ReLU stay f32.
    """
    n_layers = len(params)
    if n_layers < 1:
        raise ValueError("MLP requires at least two dims (input and output)")
    batch, in_dim = x.shape
    out_dim = params[-1][0].shape[1]
    if squeeze_output and out_dim != 1:
        raise ValueError("Last dim must be 1 when squeezing")

    # --- output-width policy: lane-dense only when padding is cheap. Padding a
    #     1-wide head to 128 lanes would inflate output writeback 128x. ---
    if out_dim % 128 == 0:
        out_width = out_dim
    elif _round_up(out_dim, 128) <= 2 * out_dim:
        out_width = _round_up(out_dim, 128)
    else:
        out_width = out_dim  # narrow masked store beats 128x byte inflation

    # --- parameter prep (zero-padding the last layer is numerically exact) ---
    flat_params = []
    for li, (w, b) in enumerate(params):
        if mxu_dtype is not None:
            w = w.astype(mxu_dtype)
        if li == n_layers - 1 and out_width != out_dim:
            w = jnp.pad(w, ((0, 0), (0, out_width - out_dim)))
            b = jnp.pad(b, (0, out_width - out_dim))
        flat_params.append(w)
        flat_params.append(b.reshape(1, -1))  # biases kept 2-D for VMEM layout

    sub = _sublane(x.dtype)  # dtype-aware sublane multiple for batch tiling
    widths = [in_dim] + [w.shape[1] for w, _ in params[:-1]] + [out_width]
    max_width = max(widths)

    # Weights are single-buffered (pl.Buffered(1)) -> count each copy once.
    weight_vmem = sum(_pad_block_bytes(p.shape, p.dtype) for p in flat_params)

    def est_vmem_bytes(tb):
        io = (2 * _pad_block_bytes((tb, in_dim), x.dtype)        # dbl-buffered x
              + 2 * _pad_block_bytes((tb, out_width), x.dtype))  # dbl-buffered out
        inter = 2 * _pad_block_bytes((tb, max_width), jnp.float32)  # f32 temps
        return io + inter + weight_vmem + (1 << 20)              # + scratch headroom

    # --- per-generation VMEM budget (128MiB on v5e/v6e, 64MiB on v7x) ---
    vmem_cap = _vmem_capacity_bytes()
    budget = max(min(int(vmem_cap * 0.75), vmem_cap - (16 << 20)), 16 << 20)

    tb = sub
    for cand in (4096, 2048, 1024, 512, 256, 128, 64, 32, 16, 8):
        if cand < sub or cand % sub:
            continue
        if est_vmem_bytes(cand) <= budget:
            tb = cand
            break
    # TODO(synk): if weight_vmem alone exceeds the budget (very wide f32 layers),
    # fall back to a K/N-tiled weight pipeline instead of resident weights.

    # Keep >=2 grid steps for large batches so v7x can shard the "parallel"
    # axis over both TensorCores (harmless on 1-TC v5e/v6e).
    if batch >= max(2 * sub, 128):
        tb = min(tb, _round_up((batch + 1) // 2, sub))
    else:
        tb = min(tb, _round_up(batch, sub))
    tb = max(tb, sub)

    padded_batch = _round_up(batch, tb)
    grid = (padded_batch // tb,)
    if padded_batch != batch:
        x = jnp.pad(x, ((0, padded_batch - batch), (0, 0)))

    kernel = _make_mlp_kernel(n_layers)

    in_specs = [pl.BlockSpec((tb, in_dim), lambda i: (i, 0))]
    for p in flat_params:
        # Constant index_map + single buffer -> VMEM-resident parameters.
        in_specs.append(
            pl.BlockSpec(p.shape, lambda i: (0, 0), pipeline_mode=pl.Buffered(1)))
    out_specs = pl.BlockSpec((tb, out_width), lambda i: (i, 0))

    dtype_bytes = jnp.dtype(x.dtype).itemsize
    flops = 2 * padded_batch * sum(w.shape[0] * w.shape[1] for w, _ in params)
    bytes_accessed = (padded_batch * in_dim * dtype_bytes
                      + padded_batch * out_width * dtype_bytes
                      + sum(int(p.size) * p.dtype.itemsize for p in flat_params))
    cost = pl.CostEstimate(flops=flops, transcendentals=0,
                           bytes_accessed=bytes_accessed)

    vmem_limit = int(min(vmem_cap, max(32 << 20, 2 * est_vmem_bytes(tb))))

    out = pl.pallas_call(
        kernel,
        out_shape=jax.ShapeDtypeStruct((padded_batch, out_width), x.dtype),
        grid=grid,
        in_specs=in_specs,
        out_specs=out_specs,
        compiler_params=pltpu.CompilerParams(
            dimension_semantics=("parallel",),
            vmem_limit_bytes=vmem_limit,
        ),
        cost_estimate=cost,
    )(x, *flat_params)

    # Slices are extra XLA copies over the output -> only when padding applied.
    if padded_batch != batch:
        out = out[:batch]
    if out_width != out_dim:
        out = out[:, :out_dim]
    if squeeze_output:
        out = jnp.squeeze(out, axis=-1)  # Squeeze(-1) module — trivial glue
    return out


def init_mlp_params(key, dims):
    """Deterministic PyTorch-Linear-style init: U(-1/sqrt(fan_in), 1/sqrt(fan_in))."""
    params = []
    for i in range(len(dims) - 1):
        fan_in, fan_out = dims[i], dims[i + 1]
        bound = 1.0 / math.sqrt(fan_in)
        key, kw, kb = jax.random.split(key, 3)
        w = jax.random.uniform(kw, (fan_in, fan_out), jnp.float32, -bound, bound)
        b = jax.random.uniform(kb, (fan_out,), jnp.float32, -bound, bound)
        params.append((w, b))
    return params


def mlp_reference(x, params, squeeze_output: bool = False):
    """Plain-JAX reference for correctness check."""
    h = x
    n = len(params)
    for i, (w, b) in enumerate(params):
        h = h @ w + b
        if i < n - 1:
            h = jnp.maximum(h, 0.0)
    if squeeze_output:
        h = jnp.squeeze(h, axis=-1)
    return h


if __name__ == "__main__":
    key = jax.random.PRNGKey(0)

    # Case 1: MLP(dims=[4, 32, 32, 1], ReLU, squeeze_output=True) — the IQL
    # value-function configuration, tiny batch (narrow unpadded output store).
    dims = [4, 32, 32, 1]
    batch = 2
    key, kx = jax.random.split(key)
    x = jax.random.normal(kx, (batch, dims[0]), jnp.float32)
    params = init_mlp_params(key, dims)

    out = jax.block_until_ready(mlp_forward(x, params, squeeze_output=True))
    ref = mlp_reference(x, params, squeeze_output=True)
    assert out.shape == (batch,), f"bad output shape {out.shape}"
    assert jnp.allclose(out, ref, atol=1e-5, rtol=1e-5), "mismatch vs reference (case 1)"

    # Case 2: ragged batch (exercises batch padding + the >=2-step grid split)
    # and out_dim > 1 without squeeze.
    dims2 = [4, 32, 8]
    batch2 = 300
    key, kx2 = jax.random.split(key)
    x2 = jax.random.normal(kx2, (batch2, dims2[0]), jnp.float32)
    params2 = init_mlp_params(key, dims2)

    out2 = jax.block_until_ready(mlp_forward(x2, params2, squeeze_output=False))
    ref2 = mlp_reference(x2, params2, squeeze_output=False)
    assert out2.shape == (batch2, dims2[-1]), f"bad output shape {out2.shape}"
    assert jnp.allclose(out2, ref2, atol=1e-5, rtol=1e-5), "mismatch vs reference (case 2)"

    # Case 3: bf16 MXU operands (f32 accumulation) on a 2-step grid.
    dims3 = [4, 64, 64, 1]
    batch3 = 256
    key, kx3 = jax.random.split(key)
    x3 = jax.random.normal(kx3, (batch3, dims3[0]), jnp.float32)
    params3 = init_mlp_params(key, dims3)

    out3 = jax.block_until_ready(
        mlp_forward(x3, params3, squeeze_output=True, mxu_dtype=jnp.bfloat16))
    params3_bf16 = [(w.astype(jnp.bfloat16).astype(jnp.float32), b) for w, b in params3]
    ref3 = mlp_reference(x3, params3_bf16, squeeze_output=True)
    assert out3.shape == (batch3,), f"bad output shape {out3.shape}"
    assert jnp.allclose(out3, ref3, atol=5e-2, rtol=5e-2), "mismatch vs reference (case 3)"

    print("KERNEL_OK")
</pallas_src>

<mosaic_0001>
module attributes {stable_mosaic.version = 11 : i64} {
  func.func @kernel(%arg0: i32, %arg1: memref<8x4xf32, #tpu.memory_space<vmem>>, %arg2: memref<4x32xf32, #tpu.memory_space<vmem>>, %arg3: memref<1x32xf32, #tpu.memory_space<vmem>>, %arg4: memref<32x32xf32, #tpu.memory_space<vmem>>, %arg5: memref<1x32xf32, #tpu.memory_space<vmem>>, %arg6: memref<32x1xf32, #tpu.memory_space<vmem>>, %arg7: memref<1x1xf32, #tpu.memory_space<vmem>>, %arg8: memref<8x1xf32, #tpu.memory_space<vmem>>) attributes {dimension_semantics = [#tpu.dimension_semantics<parallel>], iteration_bounds = array<i64: 1>, scalar_prefetch = 0 : i64, scratch_operands = 0 : i64, tpu.core_type = #tpu.core_type<tc>, window_params = [{transform_indices = @transform_0, window_bounds = array<i64: 8, 4>}, {pipeline_mode = #tpu.pipeline_mode<synchronous>, transform_indices = @transform_1, window_bounds = array<i64: 4, 32>}, {pipeline_mode = #tpu.pipeline_mode<synchronous>, transform_indices = @transform_2, window_bounds = array<i64: 1, 32>}, {pipeline_mode = #tpu.pipeline_mode<synchronous>, transform_indices = @transform_3, window_bounds = array<i64: 32, 32>}, {pipeline_mode = #tpu.pipeline_mode<synchronous>, transform_indices = @transform_4, window_bounds = array<i64: 1, 32>}, {pipeline_mode = #tpu.pipeline_mode<synchronous>, transform_indices = @transform_5, window_bounds = array<i64: 32, 1>}, {pipeline_mode = #tpu.pipeline_mode<synchronous>, transform_indices = @transform_6, window_bounds = array<i64: 1, 1>}, {transform_indices = @transform_7, window_bounds = array<i64: 8, 1>}]} {
    %c0 = arith.constant 0 : index
    %c0_0 = arith.constant 0 : index
    %0 = vector.load %arg1[%c0, %c0_0] : memref<8x4xf32, #tpu.memory_space<vmem>>, vector<8x4xf32>
    %c0_1 = arith.constant 0 : index
    %c0_2 = arith.constant 0 : index
    %1 = vector.load %arg2[%c0_1, %c0_2] : memref<4x32xf32, #tpu.memory_space<vmem>>, vector<4x32xf32>
    %c0_3 = arith.constant 0 : index
    %c0_4 = arith.constant 0 : index
    %2 = vector.load %arg3[%c0_3, %c0_4] : memref<1x32xf32, #tpu.memory_space<vmem>>, vector<1x32xf32>
    %cst = arith.constant dense<0.000000e+00> : vector<8x32xf32>
    %3 = tpu.matmul %0, %1, %cst {dimension_numbers = #tpu.dot_dimension_numbers<[1], [0], [0], [1], [0, 0, 1, 1], [], []>} : vector<8x4xf32>, vector<4x32xf32>, vector<8x32xf32> -> vector<8x32xf32>
    %4 = vector.broadcast %2 : vector<1x32xf32> to vector<8x32xf32>
    %5 = arith.addf %3, %4 : vector<8x32xf32>
    %cst_5 = arith.constant 0.000000e+00 : f32
    %6 = vector.broadcast %cst_5 : f32 to vector<8x32xf32>
    %7 = arith.maximumf %5, %6 : vector<8x32xf32>
    %c0_6 = arith.constant 0 : index
    %c0_7 = arith.constant 0 : index
    %8 = vector.load %arg4[%c0_6, %c0_7] : memref<32x32xf32, #tpu.memory_space<vmem>>, vector<32x32xf32>
    %c0_8 = arith.constant 0 : index
    %c0_9 = arith.constant 0 : index
    %9 = vector.load %arg5[%c0_8, %c0_9] : memref<1x32xf32, #tpu.memory_space<vmem>>, vector<1x32xf32>
    %cst_10 = arith.constant dense<0.000000e+00> : vector<8x32xf32>
    %10 = tpu.matmul %7, %8, %cst_10 {dimension_numbers = #tpu.dot_dimension_numbers<[1], [0], [0], [1], [0, 0, 1, 1], [], []>} : vector<8x32xf32>, vector<32x32xf32>, vector<8x32xf32> -> vector<8x32xf32>
    %11 = vector.broadcast %9 : vector<1x32xf32> to vector<8x32xf32>
    %12 = arith.addf %10, %11 : vector<8x32xf32>
    %cst_11 = arith.constant 0.000000e+00 : f32
    %13 = vector.broadcast %cst_11 : f32 to vector<8x32xf32>
    %14 = arith.maximumf %12, %13 : vector<8x32xf32>
    %c0_12 = arith.constant 0 : index
    %c0_13 = arith.constant 0 : index
    %15 = vector.load %arg6[%c0_12, %c0_13] : memref<32x1xf32, #tpu.memory_space<vmem>>, vector<32x1xf32>
    %c0_14 = arith.constant 0 : index
    %c0_15 = arith.constant 0 : index
    %16 = vector.load %arg7[%c0_14, %c0_15] : memref<1x1xf32, #tpu.memory_space<vmem>>, vector<1x1xf32>
    %cst_16 = arith.constant dense<0.000000e+00> : vector<8x1xf32>
    %17 = tpu.matmul %14, %15, %cst_16 {dimension_numbers = #tpu.dot_dimension_numbers<[1], [0], [0], [1], [0, 0, 1, 1], [], []>} : vector<8x32xf32>, vector<32x1xf32>, vector<8x1xf32> -> vector<8x1xf32>
    %18 = vector.broadcast %16 : vector<1x1xf32> to vector<8x1xf32>
    %19 = arith.addf %17, %18 : vector<8x1xf32>
    %c0_17 = arith.constant 0 : index
    %c0_18 = arith.constant 0 : index
    %20 = vector.load %arg8[%c0_17, %c0_18] : memref<8x1xf32, #tpu.memory_space<vmem>>, vector<8x1xf32>
    tpu.vector_store %arg8[%c0_17, %c0_18], %19 {strides = array<i32>} : memref<8x1xf32, #tpu.memory_space<vmem>>, vector<8x1xf32>,
    return
  }
  func.func @transform_0(%arg0: i32) -> (i32, i32) {
    %c0_i32 = arith.constant 0 : i32
    %c0_i32_0 = arith.constant 0 : i32
    return %arg0, %c0_i32 : i32, i32
  }
  func.func @transform_1(%arg0: i32) -> (i32, i32) {
    %c0_i32 = arith.constant 0 : i32
    %c0_i32_0 = arith.constant 0 : i32
    %c0_i32_1 = arith.constant 0 : i32
    return %c0_i32, %c0_i32_0 : i32, i32
  }
  func.func @transform_2(%arg0: i32) -> (i32, i32) {
    %c0_i32 = arith.constant 0 : i32
    %c0_i32_0 = arith.constant 0 : i32
    %c0_i32_1 = arith.constant 0 : i32
    return %c0_i32, %c0_i32_0 : i32, i32
  }
  func.func @transform_3(%arg0: i32) -> (i32, i32) {
    %c0_i32 = arith.constant 0 : i32
    %c0_i32_0 = arith.constant 0 : i32
    %c0_i32_1 = arith.constant 0 : i32
    return %c0_i32, %c0_i32_0 : i32, i32
  }
  func.func @transform_4(%arg0: i32) -> (i32, i32) {
    %c0_i32 = arith.constant 0 : i32
    %c0_i32_0 = arith.constant 0 : i32
    %c0_i32_1 = arith.constant 0 : i32
    return %c0_i32, %c0_i32_0 : i32, i32
  }
  func.func @transform_5(%arg0: i32) -> (i32, i32) {
    %c0_i32 = arith.constant 0 : i32
    %c0_i32_0 = arith.constant 0 : i32
    %c0_i32_1 = arith.constant 0 : i32
    return %c0_i32, %c0_i32_0 : i32, i32
  }
  func.func @transform_6(%arg0: i32) -> (i32, i32) {
    %c0_i32 = arith.constant 0 : i32
    %c0_i32_0 = arith.constant 0 : i32
    %c0_i32_1 = arith.constant 0 : i32
    return %c0_i32, %c0_i32_0 : i32, i32
  }
  func.func @transform_7(%arg0: i32) -> (i32, i32) {
    %c0_i32 = arith.constant 0 : i32
    %c0_i32_0 = arith.constant 0 : i32
    return %arg0, %c0_i32 : i32, i32
  }
}

</mosaic_0001>

<bundles_post_ra>
// kernel: tpu_custom_call.1
= control target key start
LH: loop header
LB: loop body
LE: loop exit
PB: predicated region body
PF: predicated region fallthrough
CT: control target
= control target key end

     0   :  { %vm41_vm0 = vcmask 1043456   ;;  %vm37_vm1 = vcmask 31744   ;;  %v353_v0 = vmov 0.0   ;;  %vm354_vm2 = vmmov 0   ;;  %s440_s1 = inlined_call_operand.vmem [shape: f32[4,32], index: 1, kind: input, shape index: {}]   ;;  %s441_s0 = inlined_call_operand.vmem [shape: f32[8,4], index: 0, kind: input, shape index: {}]   ;;  %s442_s3 = inlined_call_operand.vmem [shape: f32[32,32], index: 3, kind: input, shape index: {}]   ;;  %s443_s5 = inlined_call_operand.vmem [shape: f32[32,1], index: 5, kind: input, shape index: {}]   ;;  %s444_s2 = inlined_call_operand.vmem [shape: f32[1,32], index: 2, kind: input, shape index: {}]   ;;  %s445_s6 = inlined_call_operand.<no memory space> [shape: f32[1,1], index: 6, kind: input, shape index: {}]   ;;  %s446_s4 = inlined_call_operand.vmem [shape: f32[1,32], index: 4, kind: input, shape index: {}]   ;;  %s447_s7 = inlined_call_operand.vmem [shape: f32[8,1], index: 7, kind: output, shape index: {}]  }
   0x1   :  { %311 = vmatprep.subr.mxu0 %v353_v0  ;;  %v29_v1 = vld [vmem:[%s440_s1] sm:$0xf]  ;;  %313 = vmatprep.mubr.msk.f32.mxu0 %vm354_vm2, %v353_v0  ;;  %v355_v4 = vmov 0.0|0.0   ;;  %v117_v5 = vld [vmem:[%s442_s3 + $0x8] sm:$0xff]  ;;  %v118_v7 = vld [vmem:[%s442_s3 + $0x10] sm:$0xff]  ;;  %vm127_vm3 = vcmask 261120   ;;  %v12_v21 = vstv %s445_s6 }
   0x2   :  { %v28_v2 = vld [vmem:[%s441_s0] sm:$0xff]  ;;  %312 = vmatpush3.msk.msra.mxu0 %vm41_vm0, %v29_v1  ;;  %338 = vmatprep.subr.bf16.mxu1 %v355_v4  ;;  %v119_v8 = vld [vmem:[%s442_s3 + $0x18] sm:$0xff]  ;;  %v203_v11 = vld [vmem:[%s443_s5 + $0x8] sm:$0xff]  ;;  %13 = vst [vmem:[#allocation2] sm:$0x1] %v12_v21  ;;  %vm286_vm4 = vcmask 7168  }
   0x3   :  { %v116_v3 = vld [vmem:[%s442_s3] sm:$0xff]  ;;  %314 = vmatmul.mubr.msk.f32.vlgmr.msra.gmra.mrb[0].mxu0 %vm37_vm1, %v28_v2  ;;  %324 = vmatprep.mubr.msk.f32.mxu1 %vm354_vm2, %v353_v0  ;;  %v342_v9 = vpack.c.bf16 %v119_v8, %v118_v7  ;;  %v204_v18 = vld [vmem:[%s443_s5 + $0x10] sm:$0xff]  ;;  %v205_v19 = vld [vmem:[%s443_s5 + $0x18] sm:$0xff] }
   0x4   :  { %v339_v6 = vpack.c.bf16 %v117_v5, %v116_v3  ;;  %344 = vmatprep.subr.bf16.mxu0 %v355_v4  ;;  %335 = vmatprep.mubr.msk.f32.mxu0 %vm354_vm2, %v353_v0  ;;  %v202_v10 = vld [vmem:[%s443_s5] sm:$0xff]  ;;  %v348_v20 = vpack.c.bf16 %v205_v19, %v204_v18 }
   0x5   :  { %v345_v12 = vpack.c.bf16 %v203_v11, %v202_v10  ;;  %v292_v13 = vld [vmem:[%s444_s2] ss:$0 sm:$0xff] }
   0x6   :  { %340 = vmatpush3.bf16.msra.mxu1 %v339_v6  ;;  %v295_v22 = vld [vmem:[%s446_s4] ss:$0 sm:$0xff] }
   0x7   :  { %341 = vmatprep.subr.bf16.mxu1 %v355_v4  ;;  %346 = vmatpush3.bf16.msra.mxu0 %v345_v12 }
   0x8   :  { %347 = vmatprep.subr.bf16.mxu0 %v355_v4 }
   0x9   :  { %v297_v27 = vld [vmem:[#allocation2] ss:$0 sm:$0xff] }
   0xa   :  { %343 = vmatpush3.bf16.msra.mxu1 %v342_v9 }
   0xb   :  { %349 = vmatpush3.bf16.msra.mxu0 %v348_v20 }
  0xd6   :  { %v111_v14 = vpop.f32.mrb[0].mxu0 }
  0xd7   :  { %v112_v15 = vadd.f32 %v292_v13, %v111_v14  ;;  %v315_v16 = vpop.f32.mrb[1].mxu0 }
  0xd9   :  { %v115_v17 = vmax.f32 %v112_v15, 0.0 }
  0xdb   :  { %325 = vmatmul.mubr.msk.f32.vlgmr.msra.gmra.mrb[0].mxu1 %vm127_vm3, %v115_v17 }
 0x1ae   :  { %v197_v23 = vpop.f32.mrb[0].mxu1 }
 0x1af   :  { %v198_v24 = vadd.f32 %v295_v22, %v197_v23  ;;  %v326_v25 = vpop.f32.mrb[1].mxu1 }
 0x1b1   :  { %v201_v26 = vmax.f32 %v198_v24, 0.0 }
 0x1b3   :  { %336 = vmatmul.mubr.msk.f32.vlgmr.msra.gmra.mrb[2].mxu0 %vm127_vm3, %v201_v26 }
 0x286   :  { %v282_v28 = vpop.f32.mrb[2].mxu0 }
 0x287   :  { %v283_v29 = vadd.f32 %v297_v27, %v282_v28  ;;  %v337_v30 = vpop.f32.mrb[3].mxu0 }
 0x289   :  { %287 = vst.msk [vmem:[%s447_s7] sm:$0xff] %vm286_vm4, %v283_v29 }

</bundles_post_ra>
